<compile_context>
chip_gen: v5e
topology: v5e:2x2
jax: 0.10.0
libtpu: 0.0.40
codegen_flags: <defaults>
</compile_context>

<pallas_src>
import jax
import jax.numpy as jnp
from jax.experimental import pallas as pl
from jax.experimental.pallas import tpu as pltpu


# ----------------------------- kernel helpers -------------------------------

def _softmax_lanes(x):
    """Numerically stable softmax along the last (lane) axis of a 2D tile."""
    m = jnp.max(x, axis=-1, keepdims=True)
    e = jnp.exp(x - m)
    # approx=True -> EUP vrcp (otherwise-idle slot next to exp); rows sum to 1
    # only to ~1e-3, self-check tolerance is loosened accordingly.
    return e * pl.reciprocal(jnp.sum(e, axis=-1, keepdims=True), approx=True)


# ------------------------------- kernels ------------------------------------

def dot_score_kernel(hid_ref, enc_ref, out_ref):
    # Serves both 'dot' and 'general' (for 'general' the query is hid @ W,
    # precomputed in the wrapper).
    # hid_ref: (TB, H) f32 query
    # enc_ref: (L, TB, H) f32/bf16 encoder block (natural (L, B, H) layout)
    # out_ref: (TB, L) f32 lane-dense softmax rows
    hid = hid_ref[...].astype(jnp.float32)                  # (TB, H)
    enc = enc_ref[...].astype(jnp.float32)                  # (L, TB, H) f32 VPU math (v5e-safe)
    scores_lb = jnp.sum(enc * hid[None, :, :], axis=-1)     # (L, TB)  mul + lane reduce
    out_ref[...] = _softmax_lanes(scores_lb.T)              # (TB, L)


def concat_score_kernel(hq_ref, enc_ref, we_ref, v_ref, out_ref):
    # hq_ref: (TB, H) f32 = hid @ Wh.T + b (precomputed per batch in wrapper)
    # enc_ref: (L, TB, H) f32/bf16;  we_ref: (H, H) (in, out);  v_ref: (1, H) f32
    # out_ref: (TB, L) f32 (also used as the scores staging buffer)
    seq_len = enc_ref.shape[0]
    we = we_ref[...]
    hq = hq_ref[...]
    v = v_ref[...]
    # TODO(synk): flatten the enc block to (L*TB, H) for one big MXU contraction
    # once general in-kernel reshapes are required; per-L-slice matmuls keep the
    # contraction on the MXU with M=TB rows per call.
    for l in range(seq_len):                                # static unroll (trace-time L)
        ee = jnp.dot(enc_ref[l], we,
                     preferred_element_type=jnp.float32)    # (TB, H)  MXU, f32 accumulate
        energy = jnp.tanh(ee + hq)                          # (TB, H)  f32 elementwise
        out_ref[:, l:l + 1] = jnp.sum(v * energy, axis=-1, keepdims=True)  # (TB, 1)
    out_ref[...] = _softmax_lanes(out_ref[...])             # softmax over L (lanes)


# ------------------------------- wrapper -------------------------------------

def _pick_batch_tile(b, max_tile=64):
    """Largest legal batch tile: a multiple of 8 dividing B, else the full B.

    max_tile=64 keeps 2x double-buffered (L, TB, H) enc blocks comfortably inside
    v7x's 32 MiB scoped-VMEM default at production sizes (H=500).
    """
    t = max_tile
    while t >= 8:
        if b % t == 0:
            return t
        t //= 2
    return b


def attn_forward(method, hidden, encoder_outputs, params=None, *,
                 enc_dtype=None, batch_tile=None):
    """Pallas equivalent of Attn(method, H)(hidden, encoder_outputs) -> (B, 1, L).

    hidden: (1, B, H); encoder_outputs: (L, B, H) (kept in their natural layout —
    no wrapper-side HBM transpose).  enc_dtype=jnp.bfloat16 halves the dominant
    HBM stream (v6e/v7x); accumulation and softmax stay f32 inside the kernel.
    """
    L, B, H = encoder_outputs.shape
    hid = hidden.reshape(B, H).astype(jnp.float32)          # free reshape, tiny
    enc = encoder_outputs if enc_dtype is None else encoder_outputs.astype(enc_dtype)

    tb = batch_tile if batch_tile is not None else _pick_batch_tile(B)
    assert B % tb == 0, (B, tb)
    grid = (B // tb,)

    hid_spec = pl.BlockSpec((tb, H), lambda i: (i, 0))
    # If profiling on v5e shows exposed DMA, add pipeline_mode=pl.Buffered(3) here.
    enc_spec = pl.BlockSpec((L, tb, H), lambda i: (0, i, 0))
    out_spec = pl.BlockSpec((tb, L), lambda i: (i, 0))

    def const_spec(shape):
        return pl.BlockSpec(shape, lambda i, _n=len(shape): (0,) * _n)

    if method == 'dot':
        kernel = dot_score_kernel
        args = (hid, enc)
        in_specs = [hid_spec, enc_spec]
    elif method == 'general':
        # hq = hid @ W hoisted to one tiny XLA matmul; the bias term is constant
        # over L and cancels in the softmax -> W and b never enter the kernel.
        hq = hid @ params['w']                              # torch weight is (out, in)
        kernel = dot_score_kernel
        args = (hq, enc)
        in_specs = [hid_spec, enc_spec]
    elif method == 'concat':
        w = params['w']                                     # (H, 2H), torch (out, in)
        wh = w[:, :H]                                       # hidden half  (out, in)
        we = w[:, H:].T                                     # encoder half (in, out)
        if enc_dtype is not None:
            we = we.astype(enc_dtype)
        hq = hid @ wh.T + params['b'][None, :]              # (B, H) f32, tiny
        v = params['v'].reshape(1, H).astype(jnp.float32)
        kernel = concat_score_kernel
        args = (hq, enc, we, v)
        in_specs = [hid_spec, enc_spec, const_spec((H, H)), const_spec((1, H))]
    else:
        raise ValueError(method, 'is not an appropriate attention method.')

    scores = pl.pallas_call(
        kernel,
        out_shape=jax.ShapeDtypeStruct((B, L), jnp.float32),
        grid=grid,
        in_specs=in_specs,
        out_specs=out_spec,
        compiler_params=pltpu.CompilerParams(
            dimension_semantics=("parallel",)),             # v7x: batch tiles over 2 TCs
    )(*args)
    return scores[:, None, :]                               # (B, 1, L)


# ----------------------------- pure-JAX reference ----------------------------

def attn_ref(method, hidden, enc, params=None):
    if method == 'dot':
        scores = jnp.sum(hidden * enc, axis=2)
    elif method == 'general':
        energy = enc @ params['w'].T + params['b']
        scores = jnp.sum(hidden * energy, axis=2)
    else:  # concat
        hid_exp = jnp.broadcast_to(hidden, enc.shape)
        cat = jnp.concatenate([hid_exp, enc], axis=2)
        energy = jnp.tanh(cat @ params['w'].T + params['b'])
        scores = jnp.sum(params['v'] * energy, axis=2)
    return jax.nn.softmax(scores.T, axis=1)[:, None, :]


# --------------------------------- main ---------------------------------------

if __name__ == "__main__":
    H = 32      # hidden_size (module default 500; small synthetic size here)
    L = 8       # encoder sequence length
    B = 2       # batch

    key = jax.random.PRNGKey(0)
    k_hid, k_enc, k_wg, k_bg, k_wc, k_bc, k_v = jax.random.split(key, 7)

    hidden = jax.random.normal(k_hid, (1, B, H), dtype=jnp.float32)
    encoder_outputs = jax.random.normal(k_enc, (L, B, H), dtype=jnp.float32)

    params_general = {
        'w': jax.random.normal(k_wg, (H, H), dtype=jnp.float32) * 0.1,      # attn.weight
        'b': jax.random.normal(k_bg, (H,), dtype=jnp.float32) * 0.1,        # attn.bias
    }
    params_concat = {
        'w': jax.random.normal(k_wc, (H, 2 * H), dtype=jnp.float32) * 0.1,  # attn.weight
        'b': jax.random.normal(k_bc, (H,), dtype=jnp.float32) * 0.1,        # attn.bias
        'v': jax.random.normal(k_v, (H,), dtype=jnp.float32) * 0.1,         # v
    }

    cases = [
        ('dot', None),
        ('general', params_general),
        ('concat', params_concat),
    ]

    for method, params in cases:
        ref = attn_ref(method, hidden, encoder_outputs, params)

        # f32 inputs; tolerance loosened for the approx (EUP) reciprocal in softmax.
        out = jax.block_until_ready(
            attn_forward(method, hidden, encoder_outputs, params))
        assert out.shape == (B, 1, L), (method, out.shape)
        assert jnp.allclose(out, ref, atol=5e-3, rtol=5e-3), (
            f"mismatch for method={method} (f32): max err "
            f"{float(jnp.max(jnp.abs(out - ref)))}")

        # bf16 enc stream (the v6e/v7x HBM-bandwidth win); f32 accumulate + softmax.
        out_bf16 = jax.block_until_ready(
            attn_forward(method, hidden, encoder_outputs, params,
                         enc_dtype=jnp.bfloat16))
        assert out_bf16.shape == (B, 1, L), (method, out_bf16.shape)
        assert jnp.allclose(out_bf16, ref, atol=5e-2), (
            f"mismatch for method={method} (bf16): max err "
            f"{float(jnp.max(jnp.abs(out_bf16 - ref)))}")

    print("KERNEL_OK")
</pallas_src>

<mosaic_0001>
module attributes {stable_mosaic.version = 11 : i64} {
  func.func @dot_score_kernel(%arg0: i32, %arg1: memref<2x32xf32, #tpu.memory_space<vmem>>, %arg2: memref<8x2x32xf32, #tpu.memory_space<vmem>>, %arg3: memref<2x8xf32, #tpu.memory_space<vmem>>) attributes {dimension_semantics = [#tpu.dimension_semantics<parallel>], iteration_bounds = array<i64: 1>, scalar_prefetch = 0 : i64, scratch_operands = 0 : i64, tpu.core_type = #tpu.core_type<tc>, window_params = [{transform_indices = @transform_0, window_bounds = array<i64: 2, 32>}, {transform_indices = @transform_1, window_bounds = array<i64: 8, 2, 32>}, {transform_indices = @transform_2, window_bounds = array<i64: 2, 8>}]} {
    %c0 = arith.constant 0 : index
    %c0_0 = arith.constant 0 : index
    %0 = vector.load %arg1[%c0, %c0_0] : memref<2x32xf32, #tpu.memory_space<vmem>>, vector<2x32xf32>
    %c0_1 = arith.constant 0 : index
    %c0_2 = arith.constant 0 : index
    %c0_3 = arith.constant 0 : index
    %1 = vector.load %arg2[%c0_1, %c0_2, %c0_3] : memref<8x2x32xf32, #tpu.memory_space<vmem>>, vector<8x2x32xf32>
    %2 = vector.shape_cast %0 : vector<2x32xf32> to vector<1x2x32xf32>
    %3 = vector.broadcast %2 : vector<1x2x32xf32> to vector<8x2x32xf32>
    %4 = arith.mulf %1, %3 : vector<8x2x32xf32>
    %cst = arith.constant dense<0.000000e+00> : vector<8x2xf32>
    %5 = vector.multi_reduction <add>, %4, %cst [2] : vector<8x2x32xf32> to vector<8x2xf32>
    %6 = tpu.transpose %5, [1, 0] : vector<8x2xf32> -> vector<2x8xf32>
    %cst_4 = arith.constant dense<0xFF800000> : vector<2xf32>
    %7 = vector.multi_reduction <maximumf>, %6, %cst_4 [1] : vector<2x8xf32> to vector<2xf32>
    %8 = vector.shape_cast %7 : vector<2xf32> to vector<2x1xf32>
    %9 = vector.broadcast %8 : vector<2x1xf32> to vector<2x8xf32>
    %10 = arith.subf %6, %9 : vector<2x8xf32>
    %11 = math.exp %10 : vector<2x8xf32>
    %cst_5 = arith.constant dense<0.000000e+00> : vector<2xf32>
    %12 = vector.multi_reduction <add>, %11, %cst_5 [1] : vector<2x8xf32> to vector<2xf32>
    %13 = vector.shape_cast %12 : vector<2xf32> to vector<2x1xf32>
    %14 = tpu.reciprocal %13 {approx = true} : vector<2x1xf32> -> vector<2x1xf32>
    %15 = vector.broadcast %14 : vector<2x1xf32> to vector<2x8xf32>
    %16 = arith.mulf %11, %15 : vector<2x8xf32>
    %c0_6 = arith.constant 0 : index
    %c0_7 = arith.constant 0 : index
    %17 = vector.load %arg3[%c0_6, %c0_7] : memref<2x8xf32, #tpu.memory_space<vmem>>, vector<2x8xf32>
    tpu.vector_store %arg3[%c0_6, %c0_7], %16 {strides = array<i32>} : memref<2x8xf32, #tpu.memory_space<vmem>>, vector<2x8xf32>,
    return
  }
  func.func @transform_0(%arg0: i32) -> (i32, i32) {
    %c0_i32 = arith.constant 0 : i32
    %c0_i32_0 = arith.constant 0 : i32
    return %arg0, %c0_i32 : i32, i32
  }
  func.func @transform_1(%arg0: i32) -> (i32, i32, i32) {
    %c0_i32 = arith.constant 0 : i32
    %c0_i32_0 = arith.constant 0 : i32
    %c0_i32_1 = arith.constant 0 : i32
    return %c0_i32, %arg0, %c0_i32_0 : i32, i32, i32
  }
  func.func @transform_2(%arg0: i32) -> (i32, i32) {
    %c0_i32 = arith.constant 0 : i32
    %c0_i32_0 = arith.constant 0 : i32
    return %arg0, %c0_i32 : i32, i32
  }
}

</mosaic_0001>

<bundles_post_ra>
// kernel: tpu_custom_call.1
= control target key start
LH: loop header
LB: loop body
LE: loop exit
PB: predicated region body
PF: predicated region fallthrough
CT: control target
= control target key end

     0   :  { %7 = vsyncpa [#allocation3], 0  ;;  %s308_s0 = inlined_call_operand.hbm [shape: f32[2,32], index: 0, kind: input, shape index: {}]   ;;  %s309_s1 = inlined_call_operand.hbm [shape: f32[8,2,32], index: 1, kind: input, shape index: {}]   ;;  %s310_s2 = inlined_call_operand.hbm [shape: f32[2,8], index: 2, kind: output, shape index: {}]  }
   0x1   :  { %8 = vsyncpa [#allocation6], 0 }
   0x2   :  { %9 = vsyncpa [#allocation4], 0  ;;  %s15_s11 = sshll.u32 %s308_s0, 4  ;;  %s268_s12 = smov [#allocation2]   ;;  %s16_s11 = int_to_ptr.hbm [resolvable:$true] %s15_s11 }
   0x3   :  { %s17_s13 = sshll.u32 %s268_s12, 4  ;;  %s25_s16 = sshll.u32 %s309_s1, 4  ;;  %s18_s13 = int_to_ptr.vmem [resolvable:$true] %s17_s13  ;;  %s26_s16 = int_to_ptr.hbm [resolvable:$true] %s25_s16 }
   0x4   :  { %20 = dma.hbm_to_vmem [thread:$0]  %s16_s11, 32, %s18_s13, [#allocation3]  }
   0x5   :  { %s269_s17 = smov [#allocation5]   ;;  %s270_s19 = smov 32  }
   0x6   :  { %s27_s18 = sshll.u32 %s269_s17, 4  ;;  %s271_s20 = smov 2   ;;  %s28_s18 = int_to_ptr.vmem [resolvable:$true] %s27_s18 }
   0x7   :  { %33 = dma.hbm_to_vmem [thread:$0]  %s26_s16, 256, %s28_s18, [#allocation6], %s270_s19, %s270_s19, %s271_s20  }
   0x8   :  { %262 = dma.done.wait [#allocation3], 32  }
   0x9   :  { %263 = vsyncadd [#allocation3], 4294967264 }
   0xa   :  { %264 = dma.done.wait [#allocation6], 256  }
   0xb   :  { %265 = vsyncadd [#allocation6], 4294967040  ;;  %vm59_vm0 = vcmask 254976   ;;  %v42_v0 = vld [vmem:[#allocation2] sm:$0x3]  ;;  %v92_v27 = vlaneseq  ;;  %vm102_vm1 = vcmask 1041409  }
   0xc   :  { %v43_v1 = vld [vmem:[#allocation5] sm:$0x3]  ;;  %v45_v2 = vld [vmem:[#allocation5 + $0x4] sm:$0x3]  ;;  %v47_v5 = vld [vmem:[#allocation5 + $0x8] sm:$0x3] }
   0xd   :  { %v51_v3 = vmul.f32 %v43_v1, %v42_v0  ;;  %v53_v4 = vmul.f32 %v45_v2, %v42_v0  ;;  %v55_v6 = vmul.f32 %v47_v5, %v42_v0  ;;  %v44_v7 = vld [vmem:[#allocation5 + $0x2] sm:$0x3]  ;;  %v46_v8 = vld [vmem:[#allocation5 + $0x6] sm:$0x3]  ;;  %v48_v11 = vld [vmem:[#allocation5 + $0xa] sm:$0x3] }
   0xe   :  { %v52_v13 = vmul.f32 %v44_v7, %v42_v0  ;;  %v54_v14 = vmul.f32 %v46_v8, %v42_v0  ;;  %v56_v15 = vmul.f32 %v48_v11, %v42_v0  ;;  %v49_v19 = vld [vmem:[#allocation5 + $0xc] sm:$0x3]  ;;  %v50_v20 = vld [vmem:[#allocation5 + $0xe] sm:$0x3]  ;;  %v93_v29 = vand.u32 127, %v92_v27  ;;  %s272_s0 = smov [#allocation7]  }
   0xf   :  { %v60_v9 = vsel %vm59_vm0, %v51_v3, 0.0  ;;  %v66_v10 = vsel %vm59_vm0, %v53_v4, 0.0  ;;  %v72_v12 = vsel %vm59_vm0, %v55_v6, 0.0  ;;  %v57_v21 = vmul.f32 %v49_v19, %v42_v0  ;;  %s167_s1 = sshll.u32 %s272_s0, 4  ;;  %s169_s23 = sshll.u32 %s310_s2, 4  ;;  %s168_s1 = int_to_ptr.vmem [resolvable:$true] %s167_s1  ;;  %s170_s23 = int_to_ptr.hbm [resolvable:$true] %s169_s23 }
  0x10   :  { %61 = vadd.xlane.f32.xlu0 %v60_v9  ;;  %67 = vadd.xlane.f32.xlu1 %v66_v10  ;;  %v63_v16 = vsel %vm59_vm0, %v52_v13, 0.0  ;;  %v69_v17 = vsel %vm59_vm0, %v54_v14, 0.0  ;;  %v75_v18 = vsel %vm59_vm0, %v56_v15, 0.0  ;;  %v58_v22 = vmul.f32 %v50_v20, %v42_v0 }
  0x11   :  { %73 = vadd.xlane.f32.xlu2 %v72_v12  ;;  %v78_v23 = vsel %vm59_vm0, %v57_v21, 0.0  ;;  %vm104_vm2 = vcmask 1042434   ;;  %vm106_vm3 = vcmask 1043459   ;;  %vm108_vm4 = vcmask 1044484  }
  0x12   :  { %v81_v24 = vsel %vm59_vm0, %v58_v22, 0.0  ;;  %vm110_vm5 = vcmask 1045509   ;;  %vm112_vm6 = vcmask 1046534   ;;  %vm114_vm7 = vcmask 1047559  }
  0x13   :  { %vm149_vm8 = vcmask 58368  }
  0x18   :  { %64 = vadd.xlane.f32.xlu0 %v63_v16  ;;  %70 = vadd.xlane.f32.xlu1 %v69_v17 }
  0x19   :  { %76 = vadd.xlane.f32.xlu2 %v75_v18 }
  0x20   :  { %79 = vadd.xlane.f32.xlu0 %v78_v23  ;;  %82 = vadd.xlane.f32.xlu1 %v81_v24 }
  0x83   :  { %v62_v25 = vpop.xlane.xlu0 %61  ;;  %v68_v26 = vpop.xlane.xlu1 %67 }
  0x84   :  { %v74_v28 = vpop.xlane.xlu2 %73  ;;  %v94_v32 = vperm.slane %v62_v25, %v93_v29  ;;  %v96_v35 = vperm.slane %v68_v26, %v93_v29 }
  0x85   :  { %v98_v39 = vperm.slane %v74_v28, %v93_v29 }
  0x8b   :  { %v65_v30 = vpop.xlane.xlu0 %64  ;;  %v71_v31 = vpop.xlane.xlu1 %70 }
  0x8c   :  { %v95_v33 = vperm.slane %v65_v30, %v93_v29  ;;  %v97_v34 = vperm.slane %v71_v31, %v93_v29  ;;  %v77_v37 = vpop.xlane.xlu2 %76 }
  0x8d   :  { %v99_v41 = vperm.slane %v77_v37, %v93_v29 }
  0x8e   :  { %v103_v36 = vsel %vm102_vm1, %v95_v33, %v94_v32 }
  0x8f   :  { %v105_v38 = vsel %vm104_vm2, %v96_v35, %v103_v36 }
  0x90   :  { %v107_v40 = vsel %vm106_vm3, %v97_v34, %v105_v38 }
  0x91   :  { %v109_v42 = vsel %vm108_vm4, %v98_v39, %v107_v40 }
  0x92   :  { %v111_v47 = vsel %vm110_vm5, %v99_v41, %v109_v42 }
  0x93   :  { %v80_v43 = vpop.xlane.xlu0 %79  ;;  %v83_v44 = vpop.xlane.xlu1 %82 }
  0x94   :  { %v100_v45 = vperm.slane %v80_v43, %v93_v29  ;;  %v101_v46 = vperm.slane %v83_v44, %v93_v29 }
  0x96   :  { %v113_v48 = vsel %vm112_vm6, %v100_v45, %v111_v47 }
  0x97   :  { %v115_v49 = vsel %vm114_vm7, %v101_v46, %v113_v48 }
  0x98   :  { %117 = vxpose.xlu2.b32.start.end [1/1] (short) (narrow) %v115_v49, 8 }
 0x131   :  { %v133_v50 = vpop.trf.xlu2 }
 0x132   :  { %v150_v51 = vsel %vm149_vm8, %v133_v50, -inf }
 0x133   :  { %151 = vmax.xlane.f32.xlu0 %v150_v51 }
 0x1a6   :  { %v152_v52 = vpop.xlane.xlu0 %151 }
 0x1a7   :  { %v153_v53 = vsub.f32 %v133_v50, %v152_v52 }
 0x1a9   :  { %v154_v54 = vmul.f32 1.442695, %v153_v53 }
 0x1ab   :  { %186 = vpow2.f32 %v154_v54 }
 0x1b1   :  { %v187_v55 = vpop.eup %186 }
 0x1b2   :  { %v156_v56 = vsel %vm149_vm8, %v187_v55, 0.0 }
 0x1b3   :  { %157 = vadd.xlane.f32.xlu1 %v156_v56 }
 0x226   :  { %v158_v57 = vpop.xlane.xlu1 %157 }
 0x227   :  { %188 = vrcp.f32 %v158_v57 }
 0x22d   :  { %v189_v58 = vpop.eup %188 }
 0x22e   :  { %v160_v59 = vmul.f32 %v189_v58, %v187_v55 }
 0x230   :  { %161 = vst.msk [vmem:[#allocation7] sm:$0x3] %vm149_vm8, %v160_v59 }
 0x231   :  { %172 = dma.vmem_to_hbm [thread:$0]  %s168_s1, 32, %s170_s23, [#allocation4]  }
 0x232   :  { %266 = dma.done.wait [#allocation4], 32  }
 0x233   :  { %267 = vsyncadd [#allocation4], 4294967264 }
 0x234   :  { %177 = vsyncpa [#allocation3], 1 }
 0x235   :  { %178 = vsyncpa [#allocation6], 1 }
 0x236   :  { %179 = vsyncpa [#allocation4], 1 }

</bundles_post_ra>
